<compile_context>
chip_gen: v5e
topology: v5e:2x2
jax: 0.10.0
libtpu: 0.0.40
codegen_flags: <defaults>
</compile_context>

<pallas_src>
import functools

import jax
import jax.numpy as jnp
import numpy as np
from jax.experimental import pallas as pl
from jax.experimental.pallas import tpu as pltpu

LANES = 128  # one vreg / one MXU column tile worth of lanes on every generation


def _row_layout(input_size, hidden_size):
    """Row offsets inside the packed (rows, LANES) parameter buffer."""
    r_bi = input_size          # row: input biases (+ folded r/z hidden biases)
    r_bhn = input_size + 1     # row: n-gate hidden bias, pre-placed at lanes 0:H
    r_bl = input_size + 2      # row: linear-head bias at lanes 0:O
    r_whh = ((input_size + 3 + 7) // 8) * 8   # sublane-aligned start of W_hh|W_l block
    rows = ((r_whh + hidden_size + 7) // 8) * 8
    return r_bi, r_bhn, r_bl, r_whh, rows


def pack_params(params, lanes=LANES):
    """One-time packing of all six parameters into a single (rows, 128) f32 buffer.

    Lane layout of the weight rows (gate order r, z, n = PyTorch order):
      W_ih^T rows [0:I]      : lanes [0:3H]   = x-projection for r|z|n
      W_hh^T rows [R_WHH:+H] : lanes [0:3H]   = h-projection for r|z|n
                               lanes [3H:3H+O] = W_l^T (linear head)
    """
    H = params["w_hh"].shape[1]
    I = params["w_ih"].shape[1]
    O = params["w_l"].shape[0]
    assert 3 * H + O <= lanes, "gate+head packing must fit in one lane tile"
    r_bi, r_bhn, r_bl, r_whh, rows = _row_layout(I, H)

    w_ih = np.asarray(params["w_ih"], np.float32)   # (3H, I)
    w_hh = np.asarray(params["w_hh"], np.float32)   # (3H, H)
    b_ih = np.asarray(params["b_ih"], np.float32)   # (3H,)
    b_hh = np.asarray(params["b_hh"], np.float32)   # (3H,)
    w_l = np.asarray(params["w_l"], np.float32)     # (O, H)
    b_l = np.asarray(params["b_l"], np.float32)     # (O,)

    buf = np.zeros((rows, lanes), np.float32)
    buf[0:I, 0:3 * H] = w_ih.T                                   # (I, 3H)
    # r/z hidden biases fold into the hoisted input-projection bias; b_in stays
    # separate from b_hn (b_hn is multiplied by r inside the n gate).
    buf[r_bi, 0:2 * H] = b_ih[0:2 * H] + b_hh[0:2 * H]
    buf[r_bi, 2 * H:3 * H] = b_ih[2 * H:3 * H]
    buf[r_bhn, 0:H] = b_hh[2 * H:3 * H]                          # b_hn at lanes 0:H
    buf[r_bl, 0:O] = b_l
    buf[r_whh:r_whh + H, 0:3 * H] = w_hh.T                       # (H, 3H)
    buf[r_whh:r_whh + H, 3 * H:3 * H + O] = w_l.T                # (H, O) head
    return jnp.asarray(buf)


def _vgru_kernel(x_ref, h0_ref, p_ref, pred_ref, hlast_ref, gi_scr, gin_scr,
                 *, seq_len, batch, input_size, hidden_size, out_size, lanes):
    """Entire vGRU forward in a single kernel invocation (no time grid)."""
    T, B, I, H, O, L = seq_len, batch, input_size, hidden_size, out_size, lanes
    r_bi, r_bhn, r_bl, r_whh, _ = _row_layout(I, H)

    # ---- Prologue: loop-invariant parameter loads (all static slices). ----
    wih = p_ref[0:I, :]                         # (I, L)  lanes 0:3H = r|z|n
    bi = p_ref[r_bi:r_bi + 1, :]                # (1, L)
    bhn = p_ref[r_bhn:r_bhn + 1, :H]            # (1, H)  b_hn, pre-placed at lane 0
    bl = p_ref[r_bl:r_bl + 1, :O]               # (1, O)
    whh = p_ref[r_whh:r_whh + H, :]             # (H, L)  lanes 0:3H = gates, 3H:3H+O = W_l

    # Hoisted input projection for ALL timesteps: ONE fused (T*B, I)x(I, L) matmul.
    gi2d = jnp.dot(x_ref[...], wih, preferred_element_type=jnp.float32) + bi   # (T*B, L)
    # i_n (+b_in) realigned to lanes 0:H once, in the prologue (off critical path).
    gin2d = pltpu.roll(gi2d, L - 2 * H, axis=1)

    # Stage per-timestep rows into VMEM scratch so the recurrence only indexes
    # the leading time axis (pure address offsets; no per-step sublane extracts)
    # and the unrolled loop does not keep the whole table live in vregs.
    for t in range(T):
        gi_scr[t] = gi2d[t * B:(t + 1) * B, :]
        gin_scr[t] = gin2d[t * B:(t + 1) * B, :H]

    bhn_b = jnp.broadcast_to(bhn, (B, H))        # broadcast once, not per step
    h = h0_ref[0]                                # (B, H)

    # ---- Recurrence: statically unrolled; critical path per step is
    # one MXU push -> add -> sigmoid -> mul/add -> tanh -> blend. ----
    for t in range(T):
        gh = jnp.dot(h, whh, preferred_element_type=jnp.float32)   # (B, L): r|z|n in one push
        pre = gi_scr[t] + gh                                        # fused pre-activations
        sig = jax.nn.sigmoid(pre)                                   # one EUP pass; r,z in lanes 0:2H
        r = sig[:, :H]                                              # aligned (lane 0) slice
        z = pltpu.roll(sig, L - H, axis=1)[:, :H]                   # XLU; overlaps n-gate math
        hn = pltpu.roll(gh, L - 2 * H, axis=1)[:, :H] + bhn_b       # XLU; hidden under sigmoid
        n = jnp.tanh(gin_scr[t] + r * hn)
        h = n + z * (h - n)                                         # (1-z)*n + z*h, 3 VALU ops

    # ---- Epilogue: final hidden state + linear head.  The head weights live in
    # lanes 3H:3H+O of the packed RHS, so this is one more push of the already
    # resident weight matrix. ----
    hlast_ref[0] = h
    head = jnp.dot(h, whh, preferred_element_type=jnp.float32)      # (B, L)
    pred_ref[...] = pltpu.roll(head, L - 3 * H, axis=1)[:, :O] + bl


@functools.partial(jax.jit, static_argnames=("out_size",))
def vgru_forward(seq, hidden, packed_params, *, out_size=4):
    """seq: (T, B, I) f32, hidden: (1, B, H) f32, packed_params from pack_params().

    Returns (pred[-1], hidden_out) matching the PyTorch module's forward.
    """
    T, B, I = seq.shape
    H = hidden.shape[-1]
    O = out_size
    L = packed_params.shape[-1]

    seq2d = seq.reshape(T * B, I)   # fuses under jit; time-major rows

    kernel = functools.partial(
        _vgru_kernel, seq_len=T, batch=B, input_size=I,
        hidden_size=H, out_size=O, lanes=L)

    pred, h_out = pl.pallas_call(
        kernel,
        out_shape=(
            jax.ShapeDtypeStruct((B, O), jnp.float32),      # pred[-1]
            jax.ShapeDtypeStruct((1, B, H), jnp.float32),   # final hidden
        ),
        scratch_shapes=[
            pltpu.VMEM((T, B, L), jnp.float32),   # staged fused input projection
            pltpu.VMEM((T, B, H), jnp.float32),   # staged i_n (+b_in), lane-aligned
        ],
        # Hidden-state input and output share a buffer (same shape/dtype).
        input_output_aliases={1: 1},
        # Gridless on purpose: footprint < 0.1 MiB, so one invocation, no
        # per-grid-step pipeline overhead on any of v5e/v6e/v7x.
    )(seq2d, hidden, packed_params)

    return pred, h_out


def vgru_reference(seq, hidden, params):
    """Pure-JAX reference matching torch.nn.GRU + nn.Linear semantics."""
    H = params["w_hh"].shape[1]
    h = hidden[0]

    def step(h, x):
        gi = x @ params["w_ih"].T + params["b_ih"]
        gh = h @ params["w_hh"].T + params["b_hh"]
        i_r, i_z, i_n = gi[:, :H], gi[:, H:2 * H], gi[:, 2 * H:]
        h_r, h_z, h_n = gh[:, :H], gh[:, H:2 * H], gh[:, 2 * H:]
        r = jax.nn.sigmoid(i_r + h_r)
        z = jax.nn.sigmoid(i_z + h_z)
        n = jnp.tanh(i_n + r * h_n)
        h_new = (1.0 - z) * n + z * h
        return h_new, h_new

    h_last, outs = jax.lax.scan(step, h, seq)
    pred = outs @ params["w_l"].T + params["b_l"]
    return pred[-1], h_last[None]


def init_params(key, input_size, hidden_size, out_size):
    """Deterministic init mimicking PyTorch defaults: U(-1/sqrt(H), 1/sqrt(H))."""
    ks = jax.random.split(key, 6)
    s_gru = 1.0 / np.sqrt(hidden_size)
    s_lin = 1.0 / np.sqrt(hidden_size)
    u = lambda k, shape, s: jax.random.uniform(k, shape, jnp.float32, -s, s)
    return {
        "w_ih": u(ks[0], (3 * hidden_size, input_size), s_gru),
        "w_hh": u(ks[1], (3 * hidden_size, hidden_size), s_gru),
        "b_ih": u(ks[2], (3 * hidden_size,), s_gru),
        "b_hh": u(ks[3], (3 * hidden_size,), s_gru),
        "w_l": u(ks[4], (out_size, hidden_size), s_lin),
        "b_l": u(ks[5], (out_size,), s_lin),
    }


if __name__ == "__main__":
    INPUT, HIDDEN, OUT = 5, 30, 4
    T, B = 8, 2

    key = jax.random.PRNGKey(0)
    k_seq, k_par = jax.random.split(key)
    params = init_params(k_par, INPUT, HIDDEN, OUT)
    packed = pack_params(params)   # one-time repacking, outside the jitted per-call path

    seq = jax.random.normal(k_seq, (T, B, INPUT), jnp.float32)
    hidden0 = jnp.zeros((1, B, HIDDEN), jnp.float32)

    pred, h_out = vgru_forward(seq, hidden0, packed, out_size=OUT)
    pred, h_out = jax.block_until_ready((pred, h_out))

    pred_ref, h_ref = vgru_reference(seq, hidden0, params)
    np.testing.assert_allclose(np.asarray(pred), np.asarray(pred_ref), atol=1e-4, rtol=1e-4)
    np.testing.assert_allclose(np.asarray(h_out), np.asarray(h_ref), atol=1e-4, rtol=1e-4)

    assert pred.shape == (B, OUT) and h_out.shape == (1, B, HIDDEN)
    print("KERNEL_OK")
</pallas_src>

<mosaic_0001>
module attributes {stable_mosaic.version = 11 : i64} {
  func.func @_vgru_kernel(%arg0: memref<16x5xf32, #tpu.memory_space<vmem>>, %arg1: memref<1x2x30xf32, #tpu.memory_space<vmem>>, %arg2: memref<40x128xf32, #tpu.memory_space<vmem>>, %arg3: memref<2x4xf32, #tpu.memory_space<vmem>>, %arg4: memref<1x2x30xf32, #tpu.memory_space<vmem>>, %arg5: memref<8x2x128xf32, #tpu.memory_space<vmem>>, %arg6: memref<8x2x30xf32, #tpu.memory_space<vmem>>) attributes {dimension_semantics = [], scalar_prefetch = 0 : i64, scratch_operands = 2 : i64, tpu.core_type = #tpu.core_type<tc>} {
    %c0 = arith.constant 0 : index
    %c0_0 = arith.constant 0 : index
    %0 = vector.load %arg2[%c0, %c0_0] : memref<40x128xf32, #tpu.memory_space<vmem>>, vector<5x128xf32>
    %c5 = arith.constant 5 : index
    %c0_1 = arith.constant 0 : index
    %1 = vector.load %arg2[%c5, %c0_1] : memref<40x128xf32, #tpu.memory_space<vmem>>, vector<1x128xf32>
    %c6 = arith.constant 6 : index
    %c0_2 = arith.constant 0 : index
    %2 = vector.load %arg2[%c6, %c0_2] : memref<40x128xf32, #tpu.memory_space<vmem>>, vector<1x30xf32>
    %c7 = arith.constant 7 : index
    %c0_3 = arith.constant 0 : index
    %3 = vector.load %arg2[%c7, %c0_3] : memref<40x128xf32, #tpu.memory_space<vmem>>, vector<1x4xf32>
    %c8 = arith.constant 8 : index
    %c0_4 = arith.constant 0 : index
    %4 = vector.load %arg2[%c8, %c0_4] : memref<40x128xf32, #tpu.memory_space<vmem>>, vector<30x128xf32>
    %c0_5 = arith.constant 0 : index
    %c0_6 = arith.constant 0 : index
    %5 = vector.load %arg0[%c0_5, %c0_6] : memref<16x5xf32, #tpu.memory_space<vmem>>, vector<16x5xf32>
    %cst = arith.constant dense<0.000000e+00> : vector<16x128xf32>
    %6 = tpu.matmul %5, %0, %cst {dimension_numbers = #tpu.dot_dimension_numbers<[1], [0], [0], [1], [0, 0, 1, 1], [], []>} : vector<16x5xf32>, vector<5x128xf32>, vector<16x128xf32> -> vector<16x128xf32>
    %7 = vector.broadcast %1 : vector<1x128xf32> to vector<16x128xf32>
    %8 = arith.addf %6, %7 : vector<16x128xf32>
    %c68_i32 = arith.constant 68 : i32
    %9 = tpu.dynamic_rotate %8 by %c68_i32 dim 1 : vector<16x128xf32>, i32 -> vector<16x128xf32>
    %10 = vector.extract_strided_slice %8 {offsets = [0, 0], sizes = [2, 128], strides = [1, 1]} : vector<16x128xf32> to vector<2x128xf32>
    %c0_7 = arith.constant 0 : index
    %c0_8 = arith.constant 0 : index
    %c0_9 = arith.constant 0 : index
    %11 = vector.load %arg5[%c0_7, %c0_8, %c0_9] : memref<8x2x128xf32, #tpu.memory_space<vmem>>, vector<1x2x128xf32>
    %12 = vector.shape_cast %11 : vector<1x2x128xf32> to vector<2x128xf32>
    %13 = vector.shape_cast %10 : vector<2x128xf32> to vector<1x2x128xf32>
    tpu.vector_store %arg5[%c0_7, %c0_8, %c0_9], %13 {strides = array<i32>} : memref<8x2x128xf32, #tpu.memory_space<vmem>>, vector<1x2x128xf32>,
    %14 = vector.extract_strided_slice %9 {offsets = [0, 0], sizes = [2, 30], strides = [1, 1]} : vector<16x128xf32> to vector<2x30xf32>
    %c0_10 = arith.constant 0 : index
    %c0_11 = arith.constant 0 : index
    %c0_12 = arith.constant 0 : index
    %15 = vector.load %arg6[%c0_10, %c0_11, %c0_12] : memref<8x2x30xf32, #tpu.memory_space<vmem>>, vector<1x2x30xf32>
    %16 = vector.shape_cast %15 : vector<1x2x30xf32> to vector<2x30xf32>
    %17 = vector.shape_cast %14 : vector<2x30xf32> to vector<1x2x30xf32>
    tpu.vector_store %arg6[%c0_10, %c0_11, %c0_12], %17 {strides = array<i32>} : memref<8x2x30xf32, #tpu.memory_space<vmem>>, vector<1x2x30xf32>,
    %18 = vector.extract_strided_slice %8 {offsets = [2, 0], sizes = [2, 128], strides = [1, 1]} : vector<16x128xf32> to vector<2x128xf32>
    %c1 = arith.constant 1 : index
    %c0_13 = arith.constant 0 : index
    %c0_14 = arith.constant 0 : index
    %19 = vector.load %arg5[%c1, %c0_13, %c0_14] : memref<8x2x128xf32, #tpu.memory_space<vmem>>, vector<1x2x128xf32>
    %20 = vector.shape_cast %19 : vector<1x2x128xf32> to vector<2x128xf32>
    %21 = vector.shape_cast %18 : vector<2x128xf32> to vector<1x2x128xf32>
    tpu.vector_store %arg5[%c1, %c0_13, %c0_14], %21 {strides = array<i32>} : memref<8x2x128xf32, #tpu.memory_space<vmem>>, vector<1x2x128xf32>,
    %22 = vector.extract_strided_slice %9 {offsets = [2, 0], sizes = [2, 30], strides = [1, 1]} : vector<16x128xf32> to vector<2x30xf32>
    %c1_15 = arith.constant 1 : index
    %c0_16 = arith.constant 0 : index
    %c0_17 = arith.constant 0 : index
    %23 = vector.load %arg6[%c1_15, %c0_16, %c0_17] : memref<8x2x30xf32, #tpu.memory_space<vmem>>, vector<1x2x30xf32>
    %24 = vector.shape_cast %23 : vector<1x2x30xf32> to vector<2x30xf32>
    %25 = vector.shape_cast %22 : vector<2x30xf32> to vector<1x2x30xf32>
    tpu.vector_store %arg6[%c1_15, %c0_16, %c0_17], %25 {strides = array<i32>} : memref<8x2x30xf32, #tpu.memory_space<vmem>>, vector<1x2x30xf32>,
    %26 = vector.extract_strided_slice %8 {offsets = [4, 0], sizes = [2, 128], strides = [1, 1]} : vector<16x128xf32> to vector<2x128xf32>
    %c2 = arith.constant 2 : index
    %c0_18 = arith.constant 0 : index
    %c0_19 = arith.constant 0 : index
    %27 = vector.load %arg5[%c2, %c0_18, %c0_19] : memref<8x2x128xf32, #tpu.memory_space<vmem>>, vector<1x2x128xf32>
    %28 = vector.shape_cast %27 : vector<1x2x128xf32> to vector<2x128xf32>
    %29 = vector.shape_cast %26 : vector<2x128xf32> to vector<1x2x128xf32>
    tpu.vector_store %arg5[%c2, %c0_18, %c0_19], %29 {strides = array<i32>} : memref<8x2x128xf32, #tpu.memory_space<vmem>>, vector<1x2x128xf32>,
    %30 = vector.extract_strided_slice %9 {offsets = [4, 0], sizes = [2, 30], strides = [1, 1]} : vector<16x128xf32> to vector<2x30xf32>
    %c2_20 = arith.constant 2 : index
    %c0_21 = arith.constant 0 : index
    %c0_22 = arith.constant 0 : index
    %31 = vector.load %arg6[%c2_20, %c0_21, %c0_22] : memref<8x2x30xf32, #tpu.memory_space<vmem>>, vector<1x2x30xf32>
    %32 = vector.shape_cast %31 : vector<1x2x30xf32> to vector<2x30xf32>
    %33 = vector.shape_cast %30 : vector<2x30xf32> to vector<1x2x30xf32>
    tpu.vector_store %arg6[%c2_20, %c0_21, %c0_22], %33 {strides = array<i32>} : memref<8x2x30xf32, #tpu.memory_space<vmem>>, vector<1x2x30xf32>,
    %34 = vector.extract_strided_slice %8 {offsets = [6, 0], sizes = [2, 128], strides = [1, 1]} : vector<16x128xf32> to vector<2x128xf32>
    %c3 = arith.constant 3 : index
    %c0_23 = arith.constant 0 : index
    %c0_24 = arith.constant 0 : index
    %35 = vector.load %arg5[%c3, %c0_23, %c0_24] : memref<8x2x128xf32, #tpu.memory_space<vmem>>, vector<1x2x128xf32>
    %36 = vector.shape_cast %35 : vector<1x2x128xf32> to vector<2x128xf32>
    %37 = vector.shape_cast %34 : vector<2x128xf32> to vector<1x2x128xf32>
    tpu.vector_store %arg5[%c3, %c0_23, %c0_24], %37 {strides = array<i32>} : memref<8x2x128xf32, #tpu.memory_space<vmem>>, vector<1x2x128xf32>,
    %38 = vector.extract_strided_slice %9 {offsets = [6, 0], sizes = [2, 30], strides = [1, 1]} : vector<16x128xf32> to vector<2x30xf32>
    %c3_25 = arith.constant 3 : index
    %c0_26 = arith.constant 0 : index
    %c0_27 = arith.constant 0 : index
    %39 = vector.load %arg6[%c3_25, %c0_26, %c0_27] : memref<8x2x30xf32, #tpu.memory_space<vmem>>, vector<1x2x30xf32>
    %40 = vector.shape_cast %39 : vector<1x2x30xf32> to vector<2x30xf32>
    %41 = vector.shape_cast %38 : vector<2x30xf32> to vector<1x2x30xf32>
    tpu.vector_store %arg6[%c3_25, %c0_26, %c0_27], %41 {strides = array<i32>} : memref<8x2x30xf32, #tpu.memory_space<vmem>>, vector<1x2x30xf32>,
    %42 = vector.extract_strided_slice %8 {offsets = [8, 0], sizes = [2, 128], strides = [1, 1]} : vector<16x128xf32> to vector<2x128xf32>
    %c4 = arith.constant 4 : index
    %c0_28 = arith.constant 0 : index
    %c0_29 = arith.constant 0 : index
    %43 = vector.load %arg5[%c4, %c0_28, %c0_29] : memref<8x2x128xf32, #tpu.memory_space<vmem>>, vector<1x2x128xf32>
    %44 = vector.shape_cast %43 : vector<1x2x128xf32> to vector<2x128xf32>
    %45 = vector.shape_cast %42 : vector<2x128xf32> to vector<1x2x128xf32>
    tpu.vector_store %arg5[%c4, %c0_28, %c0_29], %45 {strides = array<i32>} : memref<8x2x128xf32, #tpu.memory_space<vmem>>, vector<1x2x128xf32>,
    %46 = vector.extract_strided_slice %9 {offsets = [8, 0], sizes = [2, 30], strides = [1, 1]} : vector<16x128xf32> to vector<2x30xf32>
    %c4_30 = arith.constant 4 : index
    %c0_31 = arith.constant 0 : index
    %c0_32 = arith.constant 0 : index
    %47 = vector.load %arg6[%c4_30, %c0_31, %c0_32] : memref<8x2x30xf32, #tpu.memory_space<vmem>>, vector<1x2x30xf32>
    %48 = vector.shape_cast %47 : vector<1x2x30xf32> to vector<2x30xf32>
    %49 = vector.shape_cast %46 : vector<2x30xf32> to vector<1x2x30xf32>
    tpu.vector_store %arg6[%c4_30, %c0_31, %c0_32], %49 {strides = array<i32>} : memref<8x2x30xf32, #tpu.memory_space<vmem>>, vector<1x2x30xf32>,
    %50 = vector.extract_strided_slice %8 {offsets = [10, 0], sizes = [2, 128], strides = [1, 1]} : vector<16x128xf32> to vector<2x128xf32>
    %c5_33 = arith.constant 5 : index
    %c0_34 = arith.constant 0 : index
    %c0_35 = arith.constant 0 : index
    %51 = vector.load %arg5[%c5_33, %c0_34, %c0_35] : memref<8x2x128xf32, #tpu.memory_space<vmem>>, vector<1x2x128xf32>
    %52 = vector.shape_cast %51 : vector<1x2x128xf32> to vector<2x128xf32>
    %53 = vector.shape_cast %50 : vector<2x128xf32> to vector<1x2x128xf32>
    tpu.vector_store %arg5[%c5_33, %c0_34, %c0_35], %53 {strides = array<i32>} : memref<8x2x128xf32, #tpu.memory_space<vmem>>, vector<1x2x128xf32>,
    %54 = vector.extract_strided_slice %9 {offsets = [10, 0], sizes = [2, 30], strides = [1, 1]} : vector<16x128xf32> to vector<2x30xf32>
    %c5_36 = arith.constant 5 : index
    %c0_37 = arith.constant 0 : index
    %c0_38 = arith.constant 0 : index
    %55 = vector.load %arg6[%c5_36, %c0_37, %c0_38] : memref<8x2x30xf32, #tpu.memory_space<vmem>>, vector<1x2x30xf32>
    %56 = vector.shape_cast %55 : vector<1x2x30xf32> to vector<2x30xf32>
    %57 = vector.shape_cast %54 : vector<2x30xf32> to vector<1x2x30xf32>
    tpu.vector_store %arg6[%c5_36, %c0_37, %c0_38], %57 {strides = array<i32>} : memref<8x2x30xf32, #tpu.memory_space<vmem>>, vector<1x2x30xf32>,
    %58 = vector.extract_strided_slice %8 {offsets = [12, 0], sizes = [2, 128], strides = [1, 1]} : vector<16x128xf32> to vector<2x128xf32>
    %c6_39 = arith.constant 6 : index
    %c0_40 = arith.constant 0 : index
    %c0_41 = arith.constant 0 : index
    %59 = vector.load %arg5[%c6_39, %c0_40, %c0_41] : memref<8x2x128xf32, #tpu.memory_space<vmem>>, vector<1x2x128xf32>
    %60 = vector.shape_cast %59 : vector<1x2x128xf32> to vector<2x128xf32>
    %61 = vector.shape_cast %58 : vector<2x128xf32> to vector<1x2x128xf32>
    tpu.vector_store %arg5[%c6_39, %c0_40, %c0_41], %61 {strides = array<i32>} : memref<8x2x128xf32, #tpu.memory_space<vmem>>, vector<1x2x128xf32>,
    %62 = vector.extract_strided_slice %9 {offsets = [12, 0], sizes = [2, 30], strides = [1, 1]} : vector<16x128xf32> to vector<2x30xf32>
    %c6_42 = arith.constant 6 : index
    %c0_43 = arith.constant 0 : index
    %c0_44 = arith.constant 0 : index
    %63 = vector.load %arg6[%c6_42, %c0_43, %c0_44] : memref<8x2x30xf32, #tpu.memory_space<vmem>>, vector<1x2x30xf32>
    %64 = vector.shape_cast %63 : vector<1x2x30xf32> to vector<2x30xf32>
    %65 = vector.shape_cast %62 : vector<2x30xf32> to vector<1x2x30xf32>
    tpu.vector_store %arg6[%c6_42, %c0_43, %c0_44], %65 {strides = array<i32>} : memref<8x2x30xf32, #tpu.memory_space<vmem>>, vector<1x2x30xf32>,
    %66 = vector.extract_strided_slice %8 {offsets = [14, 0], sizes = [2, 128], strides = [1, 1]} : vector<16x128xf32> to vector<2x128xf32>
    %c7_45 = arith.constant 7 : index
    %c0_46 = arith.constant 0 : index
    %c0_47 = arith.constant 0 : index
    %67 = vector.load %arg5[%c7_45, %c0_46, %c0_47] : memref<8x2x128xf32, #tpu.memory_space<vmem>>, vector<1x2x128xf32>
    %68 = vector.shape_cast %67 : vector<1x2x128xf32> to vector<2x128xf32>
    %69 = vector.shape_cast %66 : vector<2x128xf32> to vector<1x2x128xf32>
    tpu.vector_store %arg5[%c7_45, %c0_46, %c0_47], %69 {strides = array<i32>} : memref<8x2x128xf32, #tpu.memory_space<vmem>>, vector<1x2x128xf32>,
    %70 = vector.extract_strided_slice %9 {offsets = [14, 0], sizes = [2, 30], strides = [1, 1]} : vector<16x128xf32> to vector<2x30xf32>
    %c7_48 = arith.constant 7 : index
    %c0_49 = arith.constant 0 : index
    %c0_50 = arith.constant 0 : index
    %71 = vector.load %arg6[%c7_48, %c0_49, %c0_50] : memref<8x2x30xf32, #tpu.memory_space<vmem>>, vector<1x2x30xf32>
    %72 = vector.shape_cast %71 : vector<1x2x30xf32> to vector<2x30xf32>
    %73 = vector.shape_cast %70 : vector<2x30xf32> to vector<1x2x30xf32>
    tpu.vector_store %arg6[%c7_48, %c0_49, %c0_50], %73 {strides = array<i32>} : memref<8x2x30xf32, #tpu.memory_space<vmem>>, vector<1x2x30xf32>,
    %74 = vector.shape_cast %2 : vector<1x30xf32> to vector<1x30xf32>
    %75 = vector.broadcast %74 : vector<1x30xf32> to vector<2x30xf32>
    %c0_51 = arith.constant 0 : index
    %c0_52 = arith.constant 0 : index
    %c0_53 = arith.constant 0 : index
    %76 = vector.load %arg1[%c0_51, %c0_52, %c0_53] : memref<1x2x30xf32, #tpu.memory_space<vmem>>, vector<1x2x30xf32>
    %77 = vector.shape_cast %76 : vector<1x2x30xf32> to vector<2x30xf32>
    %cst_54 = arith.constant dense<0.000000e+00> : vector<2x128xf32>
    %78 = tpu.matmul %77, %4, %cst_54 {dimension_numbers = #tpu.dot_dimension_numbers<[1], [0], [0], [1], [0, 0, 1, 1], [], []>} : vector<2x30xf32>, vector<30x128xf32>, vector<2x128xf32> -> vector<2x128xf32>
    %c0_55 = arith.constant 0 : index
    %c0_56 = arith.constant 0 : index
    %c0_57 = arith.constant 0 : index
    %79 = vector.load %arg5[%c0_55, %c0_56, %c0_57] : memref<8x2x128xf32, #tpu.memory_space<vmem>>, vector<1x2x128xf32>
    %80 = vector.shape_cast %79 : vector<1x2x128xf32> to vector<2x128xf32>
    %81 = arith.addf %80, %78 : vector<2x128xf32>
    %82 = arith.negf %81 : vector<2x128xf32>
    %83 = math.exp %82 : vector<2x128xf32>
    %cst_58 = arith.constant 1.000000e+00 : f32
    %84 = vector.broadcast %cst_58 : f32 to vector<2x128xf32>
    %85 = arith.addf %84, %83 : vector<2x128xf32>
    %86 = arith.divf %84, %85 : vector<2x128xf32>
    %87 = vector.extract_strided_slice %86 {offsets = [0, 0], sizes = [2, 30], strides = [1, 1]} : vector<2x128xf32> to vector<2x30xf32>
    %c98_i32 = arith.constant 98 : i32
    %88 = tpu.dynamic_rotate %86 by %c98_i32 dim 1 : vector<2x128xf32>, i32 -> vector<2x128xf32>
    %89 = vector.extract_strided_slice %88 {offsets = [0, 0], sizes = [2, 30], strides = [1, 1]} : vector<2x128xf32> to vector<2x30xf32>
    %c68_i32_59 = arith.constant 68 : i32
    %90 = tpu.dynamic_rotate %78 by %c68_i32_59 dim 1 : vector<2x128xf32>, i32 -> vector<2x128xf32>
    %91 = vector.extract_strided_slice %90 {offsets = [0, 0], sizes = [2, 30], strides = [1, 1]} : vector<2x128xf32> to vector<2x30xf32>
    %92 = arith.addf %91, %75 : vector<2x30xf32>
    %c0_60 = arith.constant 0 : index
    %c0_61 = arith.constant 0 : index
    %c0_62 = arith.constant 0 : index
    %93 = vector.load %arg6[%c0_60, %c0_61, %c0_62] : memref<8x2x30xf32, #tpu.memory_space<vmem>>, vector<1x2x30xf32>
    %94 = vector.shape_cast %93 : vector<1x2x30xf32> to vector<2x30xf32>
    %95 = arith.mulf %87, %92 : vector<2x30xf32>
    %96 = arith.addf %94, %95 : vector<2x30xf32>
    %97 = math.tanh %96 : vector<2x30xf32>
    %98 = arith.subf %77, %97 : vector<2x30xf32>
    %99 = arith.mulf %89, %98 : vector<2x30xf32>
    %100 = arith.addf %97, %99 : vector<2x30xf32>
    %cst_63 = arith.constant dense<0.000000e+00> : vector<2x128xf32>
    %101 = tpu.matmul %100, %4, %cst_63 {dimension_numbers = #tpu.dot_dimension_numbers<[1], [0], [0], [1], [0, 0, 1, 1], [], []>} : vector<2x30xf32>, vector<30x128xf32>, vector<2x128xf32> -> vector<2x128xf32>
    %c1_64 = arith.constant 1 : index
    %c0_65 = arith.constant 0 : index
    %c0_66 = arith.constant 0 : index
    %102 = vector.load %arg5[%c1_64, %c0_65, %c0_66] : memref<8x2x128xf32, #tpu.memory_space<vmem>>, vector<1x2x128xf32>
    %103 = vector.shape_cast %102 : vector<1x2x128xf32> to vector<2x128xf32>
    %104 = arith.addf %103, %101 : vector<2x128xf32>
    %105 = arith.negf %104 : vector<2x128xf32>
    %106 = math.exp %105 : vector<2x128xf32>
    %cst_67 = arith.constant 1.000000e+00 : f32
    %107 = vector.broadcast %cst_67 : f32 to vector<2x128xf32>
    %108 = arith.addf %107, %106 : vector<2x128xf32>
    %109 = arith.divf %107, %108 : vector<2x128xf32>
    %110 = vector.extract_strided_slice %109 {offsets = [0, 0], sizes = [2, 30], strides = [1, 1]} : vector<2x128xf32> to vector<2x30xf32>
    %c98_i32_68 = arith.constant 98 : i32
    %111 = tpu.dynamic_rotate %109 by %c98_i32_68 dim 1 : vector<2x128xf32>, i32 -> vector<2x128xf32>
    %112 = vector.extract_strided_slice %111 {offsets = [0, 0], sizes = [2, 30], strides = [1, 1]} : vector<2x128xf32> to vector<2x30xf32>
    %c68_i32_69 = arith.constant 68 : i32
    %113 = tpu.dynamic_rotate %101 by %c68_i32_69 dim 1 : vector<2x128xf32>, i32 -> vector<2x128xf32>
    %114 = vector.extract_strided_slice %113 {offsets = [0, 0], sizes = [2, 30], strides = [1, 1]} : vector<2x128xf32> to vector<2x30xf32>
    %115 = arith.addf %114, %75 : vector<2x30xf32>
    %c1_70 = arith.constant 1 : index
    %c0_71 = arith.constant 0 : index
    %c0_72 = arith.constant 0 : index
    %116 = vector.load %arg6[%c1_70, %c0_71, %c0_72] : memref<8x2x30xf32, #tpu.memory_space<vmem>>, vector<1x2x30xf32>
    %117 = vector.shape_cast %116 : vector<1x2x30xf32> to vector<2x30xf32>
    %118 = arith.mulf %110, %115 : vector<2x30xf32>
    %119 = arith.addf %117, %118 : vector<2x30xf32>
    %120 = math.tanh %119 : vector<2x30xf32>
    %121 = arith.subf %100, %120 : vector<2x30xf32>
    %122 = arith.mulf %112, %121 : vector<2x30xf32>
    %123 = arith.addf %120, %122 : vector<2x30xf32>
    %cst_73 = arith.constant dense<0.000000e+00> : vector<2x128xf32>
    %124 = tpu.matmul %123, %4, %cst_73 {dimension_numbers = #tpu.dot_dimension_numbers<[1], [0], [0], [1], [0, 0, 1, 1], [], []>} : vector<2x30xf32>, vector<30x128xf32>, vector<2x128xf32> -> vector<2x128xf32>
    %c2_74 = arith.constant 2 : index
    %c0_75 = arith.constant 0 : index
    %c0_76 = arith.constant 0 : index
    %125 = vector.load %arg5[%c2_74, %c0_75, %c0_76] : memref<8x2x128xf32, #tpu.memory_space<vmem>>, vector<1x2x128xf32>
    %126 = vector.shape_cast %125 : vector<1x2x128xf32> to vector<2x128xf32>
    %127 = arith.addf %126, %124 : vector<2x128xf32>
    %128 = arith.negf %127 : vector<2x128xf32>
    %129 = math.exp %128 : vector<2x128xf32>
    %cst_77 = arith.constant 1.000000e+00 : f32
    %130 = vector.broadcast %cst_77 : f32 to vector<2x128xf32>
    %131 = arith.addf %130, %129 : vector<2x128xf32>
    %132 = arith.divf %130, %131 : vector<2x128xf32>
    %133 = vector.extract_strided_slice %132 {offsets = [0, 0], sizes = [2, 30], strides = [1, 1]} : vector<2x128xf32> to vector<2x30xf32>
    %c98_i32_78 = arith.constant 98 : i32
    %134 = tpu.dynamic_rotate %132 by %c98_i32_78 dim 1 : vector<2x128xf32>, i32 -> vector<2x128xf32>
    %135 = vector.extract_strided_slice %134 {offsets = [0, 0], sizes = [2, 30], strides = [1, 1]} : vector<2x128xf32> to vector<2x30xf32>
    %c68_i32_79 = arith.constant 68 : i32
    %136 = tpu.dynamic_rotate %124 by %c68_i32_79 dim 1 : vector<2x128xf32>, i32 -> vector<2x128xf32>
    %137 = vector.extract_strided_slice %136 {offsets = [0, 0], sizes = [2, 30], strides = [1, 1]} : vector<2x128xf32> to vector<2x30xf32>
    %138 = arith.addf %137, %75 : vector<2x30xf32>
    %c2_80 = arith.constant 2 : index
    %c0_81 = arith.constant 0 : index
    %c0_82 = arith.constant 0 : index
    %139 = vector.load %arg6[%c2_80, %c0_81, %c0_82] : memref<8x2x30xf32, #tpu.memory_space<vmem>>, vector<1x2x30xf32>
    %140 = vector.shape_cast %139 : vector<1x2x30xf32> to vector<2x30xf32>
    %141 = arith.mulf %133, %138 : vector<2x30xf32>
    %142 = arith.addf %140, %141 : vector<2x30xf32>
    %143 = math.tanh %142 : vector<2x30xf32>
    %144 = arith.subf %123, %143 : vector<2x30xf32>
    %145 = arith.mulf %135, %144 : vector<2x30xf32>
    %146 = arith.addf %143, %145 : vector<2x30xf32>
    %cst_83 = arith.constant dense<0.000000e+00> : vector<2x128xf32>
    %147 = tpu.matmul %146, %4, %cst_83 {dimension_numbers = #tpu.dot_dimension_numbers<[1], [0], [0], [1], [0, 0, 1, 1], [], []>} : vector<2x30xf32>, vector<30x128xf32>, vector<2x128xf32> -> vector<2x128xf32>
    %c3_84 = arith.constant 3 : index
    %c0_85 = arith.constant 0 : index
    %c0_86 = arith.constant 0 : index
    %148 = vector.load %arg5[%c3_84, %c0_85, %c0_86] : memref<8x2x128xf32, #tpu.memory_space<vmem>>, vector<1x2x128xf32>
    %149 = vector.shape_cast %148 : vector<1x2x128xf32> to vector<2x128xf32>
    %150 = arith.addf %149, %147 : vector<2x128xf32>
    %151 = arith.negf %150 : vector<2x128xf32>
    %152 = math.exp %151 : vector<2x128xf32>
    %cst_87 = arith.constant 1.000000e+00 : f32
    %153 = vector.broadcast %cst_87 : f32 to vector<2x128xf32>
    %154 = arith.addf %153, %152 : vector<2x128xf32>
    %155 = arith.divf %153, %154 : vector<2x128xf32>
    %156 = vector.extract_strided_slice %155 {offsets = [0, 0], sizes = [2, 30], strides = [1, 1]} : vector<2x128xf32> to vector<2x30xf32>
    %c98_i32_88 = arith.constant 98 : i32
    %157 = tpu.dynamic_rotate %155 by %c98_i32_88 dim 1 : vector<2x128xf32>, i32 -> vector<2x128xf32>
    %158 = vector.extract_strided_slice %157 {offsets = [0, 0], sizes = [2, 30], strides = [1, 1]} : vector<2x128xf32> to vector<2x30xf32>
    %c68_i32_89 = arith.constant 68 : i32
    %159 = tpu.dynamic_rotate %147 by %c68_i32_89 dim 1 : vector<2x128xf32>, i32 -> vector<2x128xf32>
    %160 = vector.extract_strided_slice %159 {offsets = [0, 0], sizes = [2, 30], strides = [1, 1]} : vector<2x128xf32> to vector<2x30xf32>
    %161 = arith.addf %160, %75 : vector<2x30xf32>
    %c3_90 = arith.constant 3 : index
    %c0_91 = arith.constant 0 : index
    %c0_92 = arith.constant 0 : index
    %162 = vector.load %arg6[%c3_90, %c0_91, %c0_92] : memref<8x2x30xf32, #tpu.memory_space<vmem>>, vector<1x2x30xf32>
    %163 = vector.shape_cast %162 : vector<1x2x30xf32> to vector<2x30xf32>
    %164 = arith.mulf %156, %161 : vector<2x30xf32>
    %165 = arith.addf %163, %164 : vector<2x30xf32>
    %166 = math.tanh %165 : vector<2x30xf32>
    %167 = arith.subf %146, %166 : vector<2x30xf32>
    %168 = arith.mulf %158, %167 : vector<2x30xf32>
    %169 = arith.addf %166, %168 : vector<2x30xf32>
    %cst_93 = arith.constant dense<0.000000e+00> : vector<2x128xf32>
    %170 = tpu.matmul %169, %4, %cst_93 {dimension_numbers = #tpu.dot_dimension_numbers<[1], [0], [0], [1], [0, 0, 1, 1], [], []>} : vector<2x30xf32>, vector<30x128xf32>, vector<2x128xf32> -> vector<2x128xf32>
    %c4_94 = arith.constant 4 : index
    %c0_95 = arith.constant 0 : index
    %c0_96 = arith.constant 0 : index
    %171 = vector.load %arg5[%c4_94, %c0_95, %c0_96] : memref<8x2x128xf32, #tpu.memory_space<vmem>>, vector<1x2x128xf32>
    %172 = vector.shape_cast %171 : vector<1x2x128xf32> to vector<2x128xf32>
    %173 = arith.addf %172, %170 : vector<2x128xf32>
    %174 = arith.negf %173 : vector<2x128xf32>
    %175 = math.exp %174 : vector<2x128xf32>
    %cst_97 = arith.constant 1.000000e+00 : f32
    %176 = vector.broadcast %cst_97 : f32 to vector<2x128xf32>
    %177 = arith.addf %176, %175 : vector<2x128xf32>
    %178 = arith.divf %176, %177 : vector<2x128xf32>
    %179 = vector.extract_strided_slice %178 {offsets = [0, 0], sizes = [2, 30], strides = [1, 1]} : vector<2x128xf32> to vector<2x30xf32>
    %c98_i32_98 = arith.constant 98 : i32
    %180 = tpu.dynamic_rotate %178 by %c98_i32_98 dim 1 : vector<2x128xf32>, i32 -> vector<2x128xf32>
    %181 = vector.extract_strided_slice %180 {offsets = [0, 0], sizes = [2, 30], strides = [1, 1]} : vector<2x128xf32> to vector<2x30xf32>
    %c68_i32_99 = arith.constant 68 : i32
    %182 = tpu.dynamic_rotate %170 by %c68_i32_99 dim 1 : vector<2x128xf32>, i32 -> vector<2x128xf32>
    %183 = vector.extract_strided_slice %182 {offsets = [0, 0], sizes = [2, 30], strides = [1, 1]} : vector<2x128xf32> to vector<2x30xf32>
    %184 = arith.addf %183, %75 : vector<2x30xf32>
    %c4_100 = arith.constant 4 : index
    %c0_101 = arith.constant 0 : index
    %c0_102 = arith.constant 0 : index
    %185 = vector.load %arg6[%c4_100, %c0_101, %c0_102] : memref<8x2x30xf32, #tpu.memory_space<vmem>>, vector<1x2x30xf32>
    %186 = vector.shape_cast %185 : vector<1x2x30xf32> to vector<2x30xf32>
    %187 = arith.mulf %179, %184 : vector<2x30xf32>
    %188 = arith.addf %186, %187 : vector<2x30xf32>
    %189 = math.tanh %188 : vector<2x30xf32>
    %190 = arith.subf %169, %189 : vector<2x30xf32>
    %191 = arith.mulf %181, %190 : vector<2x30xf32>
    %192 = arith.addf %189, %191 : vector<2x30xf32>
    %cst_103 = arith.constant dense<0.000000e+00> : vector<2x128xf32>
    %193 = tpu.matmul %192, %4, %cst_103 {dimension_numbers = #tpu.dot_dimension_numbers<[1], [0], [0], [1], [0, 0, 1, 1], [], []>} : vector<2x30xf32>, vector<30x128xf32>, vector<2x128xf32> -> vector<2x128xf32>
    %c5_104 = arith.constant 5 : index
    %c0_105 = arith.constant 0 : index
    %c0_106 = arith.constant 0 : index
    %194 = vector.load %arg5[%c5_104, %c0_105, %c0_106] : memref<8x2x128xf32, #tpu.memory_space<vmem>>, vector<1x2x128xf32>
    %195 = vector.shape_cast %194 : vector<1x2x128xf32> to vector<2x128xf32>
    %196 = arith.addf %195, %193 : vector<2x128xf32>
    %197 = arith.negf %196 : vector<2x128xf32>
    %198 = math.exp %197 : vector<2x128xf32>
    %cst_107 = arith.constant 1.000000e+00 : f32
    %199 = vector.broadcast %cst_107 : f32 to vector<2x128xf32>
    %200 = arith.addf %199, %198 : vector<2x128xf32>
    %201 = arith.divf %199, %200 : vector<2x128xf32>
    %202 = vector.extract_strided_slice %201 {offsets = [0, 0], sizes = [2, 30], strides = [1, 1]} : vector<2x128xf32> to vector<2x30xf32>
    %c98_i32_108 = arith.constant 98 : i32
    %203 = tpu.dynamic_rotate %201 by %c98_i32_108 dim 1 : vector<2x128xf32>, i32 -> vector<2x128xf32>
    %204 = vector.extract_strided_slice %203 {offsets = [0, 0], sizes = [2, 30], strides = [1, 1]} : vector<2x128xf32> to vector<2x30xf32>
    %c68_i32_109 = arith.constant 68 : i32
    %205 = tpu.dynamic_rotate %193 by %c68_i32_109 dim 1 : vector<2x128xf32>, i32 -> vector<2x128xf32>
    %206 = vector.extract_strided_slice %205 {offsets = [0, 0], sizes = [2, 30], strides = [1, 1]} : vector<2x128xf32> to vector<2x30xf32>
    %207 = arith.addf %206, %75 : vector<2x30xf32>
    %c5_110 = arith.constant 5 : index
    %c0_111 = arith.constant 0 : index
    %c0_112 = arith.constant 0 : index
    %208 = vector.load %arg6[%c5_110, %c0_111, %c0_112] : memref<8x2x30xf32, #tpu.memory_space<vmem>>, vector<1x2x30xf32>
    %209 = vector.shape_cast %208 : vector<1x2x30xf32> to vector<2x30xf32>
    %210 = arith.mulf %202, %207 : vector<2x30xf32>
    %211 = arith.addf %209, %210 : vector<2x30xf32>
    %212 = math.tanh %211 : vector<2x30xf32>
    %213 = arith.subf %192, %212 : vector<2x30xf32>
    %214 = arith.mulf %204, %213 : vector<2x30xf32>
    %215 = arith.addf %212, %214 : vector<2x30xf32>
    %cst_113 = arith.constant dense<0.000000e+00> : vector<2x128xf32>
    %216 = tpu.matmul %215, %4, %cst_113 {dimension_numbers = #tpu.dot_dimension_numbers<[1], [0], [0], [1], [0, 0, 1, 1], [], []>} : vector<2x30xf32>, vector<30x128xf32>, vector<2x128xf32> -> vector<2x128xf32>
    %c6_114 = arith.constant 6 : index
    %c0_115 = arith.constant 0 : index
    %c0_116 = arith.constant 0 : index
    %217 = vector.load %arg5[%c6_114, %c0_115, %c0_116] : memref<8x2x128xf32, #tpu.memory_space<vmem>>, vector<1x2x128xf32>
    %218 = vector.shape_cast %217 : vector<1x2x128xf32> to vector<2x128xf32>
    %219 = arith.addf %218, %216 : vector<2x128xf32>
    %220 = arith.negf %219 : vector<2x128xf32>
    %221 = math.exp %220 : vector<2x128xf32>
    %cst_117 = arith.constant 1.000000e+00 : f32
    %222 = vector.broadcast %cst_117 : f32 to vector<2x128xf32>
    %223 = arith.addf %222, %221 : vector<2x128xf32>
    %224 = arith.divf %222, %223 : vector<2x128xf32>
    %225 = vector.extract_strided_slice %224 {offsets = [0, 0], sizes = [2, 30], strides = [1, 1]} : vector<2x128xf32> to vector<2x30xf32>
    %c98_i32_118 = arith.constant 98 : i32
    %226 = tpu.dynamic_rotate %224 by %c98_i32_118 dim 1 : vector<2x128xf32>, i32 -> vector<2x128xf32>
    %227 = vector.extract_strided_slice %226 {offsets = [0, 0], sizes = [2, 30], strides = [1, 1]} : vector<2x128xf32> to vector<2x30xf32>
    %c68_i32_119 = arith.constant 68 : i32
    %228 = tpu.dynamic_rotate %216 by %c68_i32_119 dim 1 : vector<2x128xf32>, i32 -> vector<2x128xf32>
    %229 = vector.extract_strided_slice %228 {offsets = [0, 0], sizes = [2, 30], strides = [1, 1]} : vector<2x128xf32> to vector<2x30xf32>
    %230 = arith.addf %229, %75 : vector<2x30xf32>
    %c6_120 = arith.constant 6 : index
    %c0_121 = arith.constant 0 : index
    %c0_122 = arith.constant 0 : index
    %231 = vector.load %arg6[%c6_120, %c0_121, %c0_122] : memref<8x2x30xf32, #tpu.memory_space<vmem>>, vector<1x2x30xf32>
    %232 = vector.shape_cast %231 : vector<1x2x30xf32> to vector<2x30xf32>
    %233 = arith.mulf %225, %230 : vector<2x30xf32>
    %234 = arith.addf %232, %233 : vector<2x30xf32>
    %235 = math.tanh %234 : vector<2x30xf32>
    %236 = arith.subf %215, %235 : vector<2x30xf32>
    %237 = arith.mulf %227, %236 : vector<2x30xf32>
    %238 = arith.addf %235, %237 : vector<2x30xf32>
    %cst_123 = arith.constant dense<0.000000e+00> : vector<2x128xf32>
    %239 = tpu.matmul %238, %4, %cst_123 {dimension_numbers = #tpu.dot_dimension_numbers<[1], [0], [0], [1], [0, 0, 1, 1], [], []>} : vector<2x30xf32>, vector<30x128xf32>, vector<2x128xf32> -> vector<2x128xf32>
    %c7_124 = arith.constant 7 : index
    %c0_125 = arith.constant 0 : index
    %c0_126 = arith.constant 0 : index
    %240 = vector.load %arg5[%c7_124, %c0_125, %c0_126] : memref<8x2x128xf32, #tpu.memory_space<vmem>>, vector<1x2x128xf32>
    %241 = vector.shape_cast %240 : vector<1x2x128xf32> to vector<2x128xf32>
    %242 = arith.addf %241, %239 : vector<2x128xf32>
    %243 = arith.negf %242 : vector<2x128xf32>
    %244 = math.exp %243 : vector<2x128xf32>
    %cst_127 = arith.constant 1.000000e+00 : f32
    %245 = vector.broadcast %cst_127 : f32 to vector<2x128xf32>
    %246 = arith.addf %245, %244 : vector<2x128xf32>
    %247 = arith.divf %245, %246 : vector<2x128xf32>
    %248 = vector.extract_strided_slice %247 {offsets = [0, 0], sizes = [2, 30], strides = [1, 1]} : vector<2x128xf32> to vector<2x30xf32>
    %c98_i32_128 = arith.constant 98 : i32
    %249 = tpu.dynamic_rotate %247 by %c98_i32_128 dim 1 : vector<2x128xf32>, i32 -> vector<2x128xf32>
    %250 = vector.extract_strided_slice %249 {offsets = [0, 0], sizes = [2, 30], strides = [1, 1]} : vector<2x128xf32> to vector<2x30xf32>
    %c68_i32_129 = arith.constant 68 : i32
    %251 = tpu.dynamic_rotate %239 by %c68_i32_129 dim 1 : vector<2x128xf32>, i32 -> vector<2x128xf32>
    %252 = vector.extract_strided_slice %251 {offsets = [0, 0], sizes = [2, 30], strides = [1, 1]} : vector<2x128xf32> to vector<2x30xf32>
    %253 = arith.addf %252, %75 : vector<2x30xf32>
    %c7_130 = arith.constant 7 : index
    %c0_131 = arith.constant 0 : index
    %c0_132 = arith.constant 0 : index
    %254 = vector.load %arg6[%c7_130, %c0_131, %c0_132] : memref<8x2x30xf32, #tpu.memory_space<vmem>>, vector<1x2x30xf32>
    %255 = vector.shape_cast %254 : vector<1x2x30xf32> to vector<2x30xf32>
    %256 = arith.mulf %248, %253 : vector<2x30xf32>
    %257 = arith.addf %255, %256 : vector<2x30xf32>
    %258 = math.tanh %257 : vector<2x30xf32>
    %259 = arith.subf %238, %258 : vector<2x30xf32>
    %260 = arith.mulf %250, %259 : vector<2x30xf32>
    %261 = arith.addf %258, %260 : vector<2x30xf32>
    %c0_133 = arith.constant 0 : index
    %c0_134 = arith.constant 0 : index
    %c0_135 = arith.constant 0 : index
    %262 = vector.load %arg4[%c0_133, %c0_134, %c0_135] : memref<1x2x30xf32, #tpu.memory_space<vmem>>, vector<1x2x30xf32>
    %263 = vector.shape_cast %262 : vector<1x2x30xf32> to vector<2x30xf32>
    %264 = vector.shape_cast %261 : vector<2x30xf32> to vector<1x2x30xf32>
    tpu.vector_store %arg4[%c0_133, %c0_134, %c0_135], %264 {strides = array<i32>} : memref<1x2x30xf32, #tpu.memory_space<vmem>>, vector<1x2x30xf32>,
    %cst_136 = arith.constant dense<0.000000e+00> : vector<2x128xf32>
    %265 = tpu.matmul %261, %4, %cst_136 {dimension_numbers = #tpu.dot_dimension_numbers<[1], [0], [0], [1], [0, 0, 1, 1], [], []>} : vector<2x30xf32>, vector<30x128xf32>, vector<2x128xf32> -> vector<2x128xf32>
    %c38_i32 = arith.constant 38 : i32
    %266 = tpu.dynamic_rotate %265 by %c38_i32 dim 1 : vector<2x128xf32>, i32 -> vector<2x128xf32>
    %267 = vector.extract_strided_slice %266 {offsets = [0, 0], sizes = [2, 4], strides = [1, 1]} : vector<2x128xf32> to vector<2x4xf32>
    %268 = vector.broadcast %3 : vector<1x4xf32> to vector<2x4xf32>
    %269 = arith.addf %267, %268 : vector<2x4xf32>
    %c0_137 = arith.constant 0 : index
    %c0_138 = arith.constant 0 : index
    %270 = vector.load %arg3[%c0_137, %c0_138] : memref<2x4xf32, #tpu.memory_space<vmem>>, vector<2x4xf32>
    tpu.vector_store %arg3[%c0_137, %c0_138], %269 {strides = array<i32>} : memref<2x4xf32, #tpu.memory_space<vmem>>, vector<2x4xf32>,
    return
  }
}

</mosaic_0001>

<bundles_post_ra>
// kernel: vgru_forward.1
= control target key start
LH: loop header
LB: loop body
LE: loop exit
PB: predicated region body
PF: predicated region fallthrough
CT: control target
= control target key end

     0   :  { %10 = vsyncpa [#allocation5], 0  ;;  %s1004_s0 = inlined_call_operand.vmem [shape: f32[16,5], index: 0, kind: input, shape index: {}]   ;;  %s1005_s1 = inlined_call_operand.hbm [shape: f32[1,2,30], index: 1, kind: input, shape index: {}, may-alias: {1,4}]   ;;  %s1006_s2 = inlined_call_operand.hbm [shape: f32[40,128], index: 2, kind: input, shape index: {}]   ;;  %s1007_s3 = inlined_call_operand.hbm [shape: f32[2,4], index: 3, kind: output, shape index: {0}]   ;;  %s1008_s4 = inlined_call_operand.hbm [shape: f32[1,2,30], index: 4, kind: output, shape index: {1}, may-alias: {1,4}]  }
   0x1   :  { %11 = vsyncpa [#allocation8], 0 }
   0x2   :  { %12 = vsyncpa [#allocation6], 0 }
   0x3   :  { %13 = vsyncpa [#allocation11], 0  ;;  %s21_s17 = sshll.u32 %s1005_s1, 4  ;;  %s843_s18 = smov [#allocation4]   ;;  %s22_s17 = int_to_ptr.hbm [resolvable:$true] %s21_s17 }
   0x4   :  { %s23_s19 = sshll.u32 %s843_s18, 4  ;;  %s31_s22 = sshll.u32 %s1006_s2, 4  ;;  %s24_s19 = int_to_ptr.vmem [resolvable:$true] %s23_s19  ;;  %s32_s22 = int_to_ptr.hbm [resolvable:$true] %s31_s22 }
   0x5   :  { %26 = dma.hbm_to_vmem [thread:$0]  %s22_s17, 32, %s24_s19, [#allocation5]  }
   0x6   :  { %s844_s23 = smov [#allocation7]   ;;  %s845_s25 = smov 128  }
   0x7   :  { %s33_s24 = sshll.u32 %s844_s23, 4  ;;  %s846_s26 = smov 8   ;;  %s34_s24 = int_to_ptr.vmem [resolvable:$true] %s33_s24 }
   0x8   :  { %39 = dma.hbm_to_vmem [thread:$0]  %s32_s22, 640, %s34_s24, [#allocation8], %s845_s25, %s845_s25, %s846_s26  }
   0x9   :  { %835 = dma.done.wait [#allocation5], 32  }
   0xa   :  { %836 = vsyncadd [#allocation5], 4294967264 }
   0xb   :  { %837 = dma.done.wait [#allocation8], 640  }
   0xc   :  { %838 = vsyncadd [#allocation8], 4294966656  ;;  %vm66_vm0 = vcmask 1044480   ;;  %vm137_vm1 = vcmask 1045504   ;;  %vm59_vm2 = vcmask 39936   ;;  %v56_v1 = vld [vmem:[%s1004_s0] sm:$0xff] }
   0xd   :  { %v48_v0 = vld [vmem:[#allocation7] sm:$0x1f]  ;;  %v890_v3 = vld [vmem:[#allocation7 + $0x18] sm:$0xff]  ;;  %v893_v4 = vld [vmem:[#allocation7 + $0x10] sm:$0xff]  ;;  %vm133_vm3 = vcmask 244736   ;;  %s847_s2 = smov 68  }
   0xe   :  { %v886_v2 = vld [vmem:[#allocation7 + $0x20] sm:$0x3f]  ;;  %650 = vmatpush.msk.msra.mxu0 %vm66_vm0, %v48_v0  ;;  %v900_v5 = vld [vmem:[#allocation7 + $0x8] sm:$0xff]  ;;  %v906_v6 = vld [vmem:[#allocation4] sm:$0x3]  ;;  %s848_s28 = smov 98  }
   0xf   :  { %653 = vmatpush.msk.msra.mxu1 %vm137_vm1, %v886_v2  ;;  %651 = vmatmul.msk.f32.vlgmr.msra.gmra.mxu0 %vm59_vm2, %v56_v1  ;;  %v939_v7 = vld [vmem:[#allocation7 + $0x5] ss:$0 sm:$0xff]  ;;  %vm98_vm8 = vcmask 238592   ;;  %vm103_vm9 = vcmask 240642   ;;  %vm108_vm10 = vcmask 242692   ;;  %vm113_vm11 = vcmask 244742  }
  0x10   :  { %656 = vmatpush.msk.msra.mxu2 %vm137_vm1, %v886_v2  ;;  %659 = vmatpush.msk.msra.mxu3 %vm137_vm1, %v886_v2  ;;  %v949_v27 = vld [vmem:[#allocation7 + $0x6] ss:$0 sm:$0xff]  ;;  %s634_s8 = sshll.u32 %s1008_s4, 4  ;;  %s850_s9 = smov 38   ;;  %s635_s8 = int_to_ptr.hbm [resolvable:$true] %s634_s8 }
  0x11   :  { %154 = vmatpush.msra.mxu1 %v890_v3  ;;  %671 = vmatpush.msk.msrb.mxu0 %vm137_vm1, %v886_v2  ;;  %s851_s10 = smov [#allocation9]   ;;  %s623_s14 = sshll.u32 %s1007_s3, 4  ;;  %s624_s14 = int_to_ptr.hbm [resolvable:$true] %s623_s14 }
  0x12   :  { %210 = vmatpush.msra.mxu2 %v890_v3  ;;  %266 = vmatpush.msra.mxu3 %v890_v3  ;;  %s621_s11 = sshll.u32 %s851_s10, 4  ;;  %s622_s11 = int_to_ptr.vmem [resolvable:$true] %s621_s11 }
  0x13   :  { %155 = vmatpush.msra.mxu1 %v893_v4  ;;  %490 = vmatpush.msrb.mxu0 %v890_v3 }
  0x14   :  { %211 = vmatpush.msra.mxu2 %v893_v4  ;;  %267 = vmatpush.msra.mxu3 %v893_v4 }
  0x15   :  { %156 = vmatpush.msra.mxu1 %v900_v5  ;;  %491 = vmatpush.msrb.mxu0 %v893_v4 }
  0x16   :  { %654 = vmatmul.msk.f32.vlgmr.msra.gmra.mxu1 %vm133_vm3, %v906_v6  ;;  %212 = vmatpush.msra.mxu2 %v900_v5 }
  0x17   :  { %268 = vmatpush.msra.mxu3 %v900_v5  ;;  %662 = vmatpush.msk.msrb.mxu1 %vm137_vm1, %v886_v2 }
  0x18   :  { %665 = vmatpush.msk.msrb.mxu2 %vm137_vm1, %v886_v2  ;;  %492 = vmatpush.msrb.mxu0 %v900_v5 }
  0x19   :  { %668 = vmatpush.msk.msrb.mxu3 %vm137_vm1, %v886_v2  ;;  %322 = vmatpush.msrb.mxu1 %v890_v3 }
  0x1a   :  { %378 = vmatpush.msrb.mxu2 %v890_v3 }
  0x1b   :  { %434 = vmatpush.msrb.mxu3 %v890_v3  ;;  %323 = vmatpush.msrb.mxu1 %v893_v4 }
  0x1c   :  { %379 = vmatpush.msrb.mxu2 %v893_v4 }
  0x1d   :  { %435 = vmatpush.msrb.mxu3 %v893_v4  ;;  %324 = vmatpush.msrb.mxu1 %v900_v5 }
  0x1e   :  { %380 = vmatpush.msrb.mxu2 %v900_v5 }
  0x1f   :  { %436 = vmatpush.msrb.mxu3 %v900_v5  ;;  %674 = vmatpush.msk.msra.mxu1 %vm137_vm1, %v886_v2 }
  0x21   :  { %546 = vmatpush.msra.mxu1 %v890_v3 }
  0x23   :  { %547 = vmatpush.msra.mxu1 %v893_v4 }
  0x25   :  { %548 = vmatpush.msra.mxu1 %v900_v5 }
  0x8c   :  { %v87_v8 = vpop.f32.mrf.mxu0 }
  0x8d   :  { %v88_v9 = vadd.f32 %v939_v7, %v87_v8 }
  0x8f   :  { %97 = vst [vmem:[#allocation2] sm:$0xf] %v88_v9   ;;  %93 = vrot.lane.b32.xlu0 %v88_v9, %s847_s2 }
  0x90   :  { %106 = vst [vmem:[#allocation2] sm:$0xf0] %v88_v9  }
  0x93   :  { %v158_v10 = vpop.f32.mrf.mxu1 }
  0x96   :  { %v161_v11 = vld [vmem:[#allocation2] sm:$0x3]  ;;  %v217_v39 = vld [vmem:[#allocation2 + $0x2] sm:$0x3] }
  0x97   :  { %v162_v12 = vadd.f32 %v161_v11, %v158_v10  ;;  %184 = vrot.lane.b32.xlu0 %v158_v10, %s847_s2  ;;  %v273_v1 = vld [vmem:[#allocation2 + $0x4] sm:$0x3] }
  0x99   :  { %v655_v13 = vmul.f32 -1.442695, %v162_v12 }
  0x9b   :  { %691 = vpow2.f32 %v655_v13 }
  0xa1   :  { %v692_v14 = vpop.eup %691 }
  0xa2   :  { %v166_v15 = vadd.f32 1.0, %v692_v14 }
  0xa4   :  { %693 = vrcp.f32 %v166_v15  ;;  %v178_v19 = vand.u32 2147483648, %v166_v15  ;;  %v176_v21 = vand.u32 2147483647, %v166_v15  ;;  %vm172_vm5 = vweird.f32 %v166_v15 }
  0xa6   :  { %v179_v23 = vor.u32 1.1754944e-38, %v178_v19  ;;  %vm177_vm7 = vcmp.eq.f32.partialorder %v176_v21, 8.507059e+37 }
  0xaa   :  { %v694_v16 = vpop.eup %693 }
  0xab   :  { %v168_v17 = vmul.f32 %v694_v16, %v166_v15  ;;  %vm173_vm4 = vweird.f32 %v694_v16 }
  0xac   :  { %vm174_vm6 = vmor %vm172_vm5, %vm173_vm4 }
  0xad   :  { %v169_v18 = vsub.f32 1.0, %v168_v17 }
  0xaf   :  { %v170_v20 = vmul.f32 %v694_v16, %v169_v18 }
  0xb1   :  { %v171_v22 = vadd.f32 %v694_v16, %v170_v20 }
  0xb3   :  { %v175_v24 = vsel %vm174_vm6, %v694_v16, %v171_v22 }
  0xb4   :  { %v180_v25 = vsel %vm177_vm7, %v179_v23, %v175_v24 }
  0xb5   :  { %182 = vrot.lane.b32.xlu1 %v180_v25, %s848_s28 }
 0x101   :  { %v94_v26 = vpop.permute.xlu0 %93 }
 0x102   :  { %99 = vst.msk [vmem:[#allocation3] sm:$0x3] %vm98_vm8, %v94_v26 }
 0x103   :  { %104 = vst.msk [vmem:[#allocation3] sm:$0xc] %vm103_vm9, %v94_v26 }
 0x104   :  { %109 = vst.msk [vmem:[#allocation3] sm:$0x30] %vm108_vm10, %v94_v26 }
 0x105   :  { %114 = vst.msk [vmem:[#allocation3] sm:$0xc0] %vm113_vm11, %v94_v26 }
 0x109   :  { %v185_v28 = vpop.permute.xlu0 %184  ;;  %v187_v31 = vld [vmem:[#allocation3] sm:$0x3] }
 0x10a   :  { %v186_v29 = vadd.f32 %v949_v27, %v185_v28  ;;  %v243_v57 = vld [vmem:[#allocation3 + $0x2] sm:$0x3] }
 0x10b   :  { %v299_v20 = vld [vmem:[#allocation3 + $0x4] sm:$0x3] }
 0x10c   :  { %v188_v30 = vmul.f32 %v186_v29, %v180_v25  ;;  %v329_v29 = vld [vmem:[#allocation2 + $0x6] sm:$0x3] }
 0x10e   :  { %v189_v32 = vadd.f32 %v188_v30, %v187_v31 }
 0x110   :  { %695 = vtanh.f32 %v189_v32 }
 0x116   :  { %v696_v33 = vpop.eup %695 }
 0x117   :  { %v191_v34 = vsub.f32 %v906_v6, %v696_v33 }
 0x127   :  { %v183_v35 = vpop.permute.xlu1 %182 }
 0x128   :  { %v192_v36 = vmul.f32 %v191_v34, %v183_v35 }
 0x12a   :  { %v193_v37 = vadd.f32 %v696_v33, %v192_v36 }
 0x12c   :  { %657 = vmatmul.msk.f32.vlgmr.msra.gmra.mxu2 %vm133_vm3, %v193_v37 }
 0x12d   :  { %677 = vmatpush.msk.msra.mxu2 %vm137_vm1, %v886_v2 }
 0x12f   :  { %603 = vmatpush.msra.mxu2 %v890_v3 }
 0x131   :  { %604 = vmatpush.msra.mxu2 %v893_v4 }
 0x133   :  { %605 = vmatpush.msra.mxu2 %v900_v5 }
 0x1af   :  { %v214_v38 = vpop.f32.mrf.mxu2 }
 0x1b0   :  { %v218_v40 = vadd.f32 %v217_v39, %v214_v38  ;;  %240 = vrot.lane.b32.xlu1 %v214_v38, %s847_s2 }
 0x1b2   :  { %v658_v41 = vmul.f32 -1.442695, %v218_v40 }
 0x1b4   :  { %697 = vpow2.f32 %v658_v41 }
 0x1ba   :  { %v698_v42 = vpop.eup %697 }
 0x1bb   :  { %v222_v43 = vadd.f32 1.0, %v698_v42 }
 0x1bd   :  { %699 = vrcp.f32 %v222_v43  ;;  %v234_v47 = vand.u32 2147483648, %v222_v43  ;;  %v232_v49 = vand.u32 2147483647, %v222_v43  ;;  %vm228_vm13 = vweird.f32 %v222_v43 }
 0x1bf   :  { %v235_v51 = vor.u32 1.1754944e-38, %v234_v47  ;;  %vm233_vm15 = vcmp.eq.f32.partialorder %v232_v49, 8.507059e+37 }
 0x1c3   :  { %v700_v44 = vpop.eup %699 }
 0x1c4   :  { %v224_v45 = vmul.f32 %v700_v44, %v222_v43  ;;  %vm229_vm12 = vweird.f32 %v700_v44 }
 0x1c5   :  { %vm230_vm14 = vmor %vm228_vm13, %vm229_vm12 }
 0x1c6   :  { %v225_v46 = vsub.f32 1.0, %v224_v45 }
 0x1c8   :  { %v226_v48 = vmul.f32 %v700_v44, %v225_v46 }
 0x1ca   :  { %v227_v50 = vadd.f32 %v700_v44, %v226_v48  ;;  %v355_v48 = vld [vmem:[#allocation3 + $0x6] sm:$0x3] }
 0x1cc   :  { %v231_v52 = vsel %vm230_vm14, %v700_v44, %v227_v50  ;;  %v57_v44 = vld [vmem:[%s1004_s0 + $0x8] sm:$0xff]  ;;  %s849_s0 = smov [#allocation10]  }
 0x1cd   :  { %v236_v53 = vsel %vm233_vm15, %v235_v51, %v231_v52  ;;  %652 = vmatmul.msk.f32.gmra.mxu0 %vm59_vm2, %v57_v44  ;;  %s632_s5 = sshll.u32 %s849_s0, 4  ;;  %s633_s5 = int_to_ptr.vmem [resolvable:$true] %s632_s5 }
 0x1ce   :  { %238 = vrot.lane.b32.xlu2 %v236_v53, %s848_s28 }
 0x222   :  { %v241_v54 = vpop.permute.xlu1 %240 }
 0x223   :  { %v242_v55 = vadd.f32 %v949_v27, %v241_v54 }
 0x225   :  { %v244_v56 = vmul.f32 %v242_v55, %v236_v53 }
 0x227   :  { %v245_v58 = vadd.f32 %v244_v56, %v243_v57 }
 0x228   :  { %v239_v61 = vpop.permute.xlu2 %238 }
 0x229   :  { %701 = vtanh.f32 %v245_v58 }
 0x22f   :  { %v702_v59 = vpop.eup %701 }
 0x230   :  { %v247_v60 = vsub.f32 %v193_v37, %v702_v59 }
 0x232   :  { %v248_v62 = vmul.f32 %v247_v60, %v239_v61 }
 0x234   :  { %v249_v63 = vadd.f32 %v702_v59, %v248_v62 }
 0x236   :  { %660 = vmatmul.msk.f32.vlgmr.msra.gmra.mxu3 %vm133_vm3, %v249_v63 }
 0x24a   :  { %v90_v55 = vpop.f32.mrf.mxu0 }
 0x24b   :  { %v91_v56 = vadd.f32 %v939_v7, %v90_v55 }
 0x24d   :  { %116 = vst [vmem:[#allocation2 + $0x8] sm:$0xf] %v91_v56  }
 0x24e   :  { %124 = vst [vmem:[#allocation2 + $0x8] sm:$0xf0] %v91_v56  }
 0x254   :  { %v385_v57 = vld [vmem:[#allocation2 + $0x8] sm:$0x3] }
 0x2b9   :  { %v270_v0 = vpop.f32.mrf.mxu3 }
 0x2ba   :  { %v274_v2 = vadd.f32 %v273_v1, %v270_v0  ;;  %296 = vrot.lane.b32.xlu2 %v270_v0, %s847_s2 }
 0x2bc   :  { %v661_v3 = vmul.f32 -1.442695, %v274_v2 }
 0x2be   :  { %703 = vpow2.f32 %v661_v3 }
 0x2c4   :  { %v704_v4 = vpop.eup %703 }
 0x2c5   :  { %v278_v5 = vadd.f32 1.0, %v704_v4 }
 0x2c7   :  { %705 = vrcp.f32 %v278_v5  ;;  %v290_v10 = vand.u32 2147483648, %v278_v5  ;;  %v288_v12 = vand.u32 2147483647, %v278_v5  ;;  %vm284_vm1 = vweird.f32 %v278_v5 }
 0x2c9   :  { %v291_v14 = vor.u32 1.1754944e-38, %v290_v10  ;;  %vm289_vm5 = vcmp.eq.f32.partialorder %v288_v12, 8.507059e+37 }
 0x2cd   :  { %v706_v6 = vpop.eup %705 }
 0x2ce   :  { %v280_v8 = vmul.f32 %v706_v6, %v278_v5  ;;  %vm285_vm0 = vweird.f32 %v706_v6 }
 0x2cf   :  { %vm286_vm4 = vmor %vm284_vm1, %vm285_vm0 }
 0x2d0   :  { %v281_v9 = vsub.f32 1.0, %v280_v8 }
 0x2d2   :  { %v282_v11 = vmul.f32 %v706_v6, %v281_v9 }
 0x2d4   :  { %v283_v13 = vadd.f32 %v706_v6, %v282_v11 }
 0x2d6   :  { %v287_v15 = vsel %vm286_vm4, %v706_v6, %v283_v13 }
 0x2d7   :  { %v292_v16 = vsel %vm289_vm5, %v291_v14, %v287_v15 }
 0x2d8   :  { %294 = vrot.lane.b32.xlu0 %v292_v16, %s848_s28 }
 0x2e0   :  { %95 = vrot.lane.b32.xlu0 %v91_v56, %s847_s2 }
 0x314   :  { %v297_v17 = vpop.permute.xlu2 %296 }
 0x315   :  { %v298_v18 = vadd.f32 %v949_v27, %v297_v17 }
 0x317   :  { %v300_v19 = vmul.f32 %v298_v18, %v292_v16 }
 0x319   :  { %v301_v21 = vadd.f32 %v300_v19, %v299_v20 }
 0x31b   :  { %707 = vtanh.f32 %v301_v21  ;;  %v441_v21 = vld [vmem:[#allocation2 + $0xa] sm:$0x3] }
 0x321   :  { %v708_v22 = vpop.eup %707 }
 0x322   :  { %v303_v23 = vsub.f32 %v249_v63, %v708_v22 }
 0x34a   :  { %v295_v24 = vpop.permute.xlu0 %294 }
 0x34b   :  { %v304_v25 = vmul.f32 %v303_v23, %v295_v24 }
 0x34d   :  { %v305_v26 = vadd.f32 %v708_v22, %v304_v25 }
 0x34f   :  { %663 = vmatmul.msk.f32.vlgmr.msrb.gmra.mxu1 %vm133_vm3, %v305_v26 }
 0x352   :  { %v96_v9 = vpop.permute.xlu0 %95 }
 0x353   :  { %118 = vst.msk [vmem:[#allocation3 + $0x8] sm:$0x3] %vm98_vm8, %v96_v9 }
 0x354   :  { %122 = vst.msk [vmem:[#allocation3 + $0x8] sm:$0xc] %vm103_vm9, %v96_v9 }
 0x355   :  { %126 = vst.msk [vmem:[#allocation3 + $0x8] sm:$0x30] %vm108_vm10, %v96_v9 }
 0x356   :  { %130 = vst.msk [vmem:[#allocation3 + $0x8] sm:$0xc0] %vm113_vm11, %v96_v9 }
 0x35a   :  { %v411_v12 = vld [vmem:[#allocation3 + $0x8] sm:$0x3] }
 0x3cc   :  { %v326_v28 = vpop.f32.mrf.mxu1 }
 0x3cd   :  { %v330_v30 = vadd.f32 %v329_v29, %v326_v28  ;;  %352 = vrot.lane.b32.xlu1 %v326_v28, %s847_s2 }
 0x3cf   :  { %v664_v31 = vmul.f32 -1.442695, %v330_v30 }
 0x3d1   :  { %709 = vpow2.f32 %v664_v31 }
 0x3d7   :  { %v710_v32 = vpop.eup %709 }
 0x3d8   :  { %v334_v33 = vadd.f32 1.0, %v710_v32 }
 0x3da   :  { %711 = vrcp.f32 %v334_v33  ;;  %v346_v37 = vand.u32 2147483648, %v334_v33  ;;  %v344_v39 = vand.u32 2147483647, %v334_v33  ;;  %vm340_vm7 = vweird.f32 %v334_v33 }
 0x3dc   :  { %v347_v41 = vor.u32 1.1754944e-38, %v346_v37  ;;  %vm345_vm13 = vcmp.eq.f32.partialorder %v344_v39, 8.507059e+37 }
 0x3e0   :  { %v712_v34 = vpop.eup %711 }
 0x3e1   :  { %v336_v35 = vmul.f32 %v712_v34, %v334_v33  ;;  %vm341_vm6 = vweird.f32 %v712_v34 }
 0x3e2   :  { %vm342_vm12 = vmor %vm340_vm7, %vm341_vm6 }
 0x3e3   :  { %v337_v36 = vsub.f32 1.0, %v336_v35 }
 0x3e5   :  { %v338_v38 = vmul.f32 %v712_v34, %v337_v36 }
 0x3e7   :  { %v339_v40 = vadd.f32 %v712_v34, %v338_v38 }
 0x3e9   :  { %v343_v42 = vsel %vm342_vm12, %v712_v34, %v339_v40  ;;  %v467_v40 = vld [vmem:[#allocation3 + $0xa] sm:$0x3] }
 0x3ea   :  { %v348_v43 = vsel %vm345_vm13, %v347_v41, %v343_v42 }
 0x3eb   :  { %350 = vrot.lane.b32.xlu2 %v348_v43, %s848_s28 }
 0x43f   :  { %v353_v45 = vpop.permute.xlu1 %352 }
 0x440   :  { %v354_v46 = vadd.f32 %v949_v27, %v353_v45 }
 0x442   :  { %v356_v47 = vmul.f32 %v354_v46, %v348_v43 }
 0x444   :  { %v357_v49 = vadd.f32 %v356_v47, %v355_v48  ;;  %v497_v48 = vld [vmem:[#allocation2 + $0xc] sm:$0x3] }
 0x445   :  { %v351_v52 = vpop.permute.xlu2 %350 }
 0x446   :  { %713 = vtanh.f32 %v357_v49 }
 0x44c   :  { %v714_v50 = vpop.eup %713 }
 0x44d   :  { %v359_v51 = vsub.f32 %v305_v26, %v714_v50 }
 0x44f   :  { %v360_v53 = vmul.f32 %v359_v51, %v351_v52 }
 0x451   :  { %v361_v54 = vadd.f32 %v714_v50, %v360_v53 }
 0x453   :  { %666 = vmatmul.msk.f32.vlgmr.msrb.gmra.mxu2 %vm133_vm3, %v361_v54 }
 0x4d6   :  { %v382_v58 = vpop.f32.mrf.mxu2 }
 0x4d7   :  { %v386_v59 = vadd.f32 %v385_v57, %v382_v58  ;;  %408 = vrot.lane.b32.xlu1 %v382_v58, %s847_s2 }
 0x4d9   :  { %v667_v60 = vmul.f32 -1.442695, %v386_v59 }
 0x4db   :  { %715 = vpow2.f32 %v667_v60 }
 0x4e1   :  { %v716_v61 = vpop.eup %715 }
 0x4e2   :  { %v390_v62 = vadd.f32 1.0, %v716_v61 }
 0x4e4   :  { %717 = vrcp.f32 %v390_v62  ;;  %v402_v2 = vand.u32 2147483648, %v390_v62  ;;  %v400_v7 = vand.u32 2147483647, %v390_v62  ;;  %vm396_vm14 = vweird.f32 %v390_v62 }
 0x4e6   :  { %v403_v5 = vor.u32 1.1754944e-38, %v402_v2  ;;  %vm401_vm0 = vcmp.eq.f32.partialorder %v400_v7, 8.507059e+37  ;;  %v523_v2 = vld [vmem:[#allocation3 + $0xc] sm:$0x3] }
 0x4ea   :  { %v718_v63 = vpop.eup %717 }
 0x4eb   :  { %v392_v0 = vmul.f32 %v718_v63, %v390_v62  ;;  %vm397_vm2 = vweird.f32 %v718_v63 }
 0x4ec   :  { %vm398_vm15 = vmor %vm396_vm14, %vm397_vm2 }
 0x4ed   :  { %v393_v1 = vsub.f32 1.0, %v392_v0 }
 0x4ef   :  { %v394_v3 = vmul.f32 %v718_v63, %v393_v1 }
 0x4f1   :  { %v395_v4 = vadd.f32 %v718_v63, %v394_v3 }
 0x4f3   :  { %v399_v6 = vsel %vm398_vm15, %v718_v63, %v395_v4 }
 0x4f4   :  { %v404_v8 = vsel %vm401_vm0, %v403_v5, %v399_v6 }
 0x4f5   :  { %406 = vrot.lane.b32.xlu2 %v404_v8, %s848_s28 }
 0x549   :  { %v409_v10 = vpop.permute.xlu1 %408 }
 0x54a   :  { %v410_v11 = vadd.f32 %v949_v27, %v409_v10  ;;  %v553_v10 = vld [vmem:[#allocation2 + $0xe] sm:$0x3] }
 0x54c   :  { %v412_v13 = vmul.f32 %v410_v11, %v404_v8 }
 0x54e   :  { %v413_v14 = vadd.f32 %v412_v13, %v411_v12 }
 0x54f   :  { %v407_v17 = vpop.permute.xlu2 %406 }
 0x550   :  { %719 = vtanh.f32 %v413_v14 }
 0x556   :  { %v720_v15 = vpop.eup %719 }
 0x557   :  { %v415_v16 = vsub.f32 %v361_v54, %v720_v15 }
 0x559   :  { %v416_v18 = vmul.f32 %v415_v16, %v407_v17 }
 0x55b   :  { %v417_v19 = vadd.f32 %v720_v15, %v416_v18 }
 0x55d   :  { %669 = vmatmul.msk.f32.vlgmr.msrb.gmra.mxu3 %vm133_vm3, %v417_v19 }
 0x5e0   :  { %v438_v20 = vpop.f32.mrf.mxu3 }
 0x5e1   :  { %v442_v22 = vadd.f32 %v441_v21, %v438_v20  ;;  %464 = vrot.lane.b32.xlu0 %v438_v20, %s847_s2 }
 0x5e3   :  { %v670_v23 = vmul.f32 -1.442695, %v442_v22 }
 0x5e5   :  { %721 = vpow2.f32 %v670_v23 }
 0x5eb   :  { %v722_v24 = vpop.eup %721 }
 0x5ec   :  { %v446_v25 = vadd.f32 1.0, %v722_v24 }
 0x5ee   :  { %723 = vrcp.f32 %v446_v25  ;;  %v458_v30 = vand.u32 2147483648, %v446_v25  ;;  %v456_v32 = vand.u32 2147483647, %v446_v25  ;;  %vm452_vm10 = vweird.f32 %v446_v25 }
 0x5f0   :  { %v459_v34 = vor.u32 1.1754944e-38, %v458_v30  ;;  %vm457_vm1 = vcmp.eq.f32.partialorder %v456_v32, 8.507059e+37 }
 0x5f4   :  { %v724_v26 = vpop.eup %723 }
 0x5f5   :  { %v448_v28 = vmul.f32 %v724_v26, %v446_v25  ;;  %vm453_vm9 = vweird.f32 %v724_v26 }
 0x5f6   :  { %vm454_vm11 = vmor %vm452_vm10, %vm453_vm9 }
 0x5f7   :  { %v449_v29 = vsub.f32 1.0, %v448_v28 }
 0x5f9   :  { %v450_v31 = vmul.f32 %v724_v26, %v449_v29  ;;  %v579_v29 = vld [vmem:[#allocation3 + $0xe] sm:$0x3] }
 0x5fb   :  { %v451_v33 = vadd.f32 %v724_v26, %v450_v31 }
 0x5fd   :  { %v455_v35 = vsel %vm454_vm11, %v724_v26, %v451_v33 }
 0x5fe   :  { %v460_v36 = vsel %vm457_vm1, %v459_v34, %v455_v35 }
 0x5ff   :  { %462 = vrot.lane.b32.xlu1 %v460_v36, %s848_s28 }
 0x653   :  { %v465_v37 = vpop.permute.xlu0 %464 }
 0x654   :  { %v466_v38 = vadd.f32 %v949_v27, %v465_v37 }
 0x656   :  { %v468_v39 = vmul.f32 %v466_v38, %v460_v36  ;;  %v690_v36 = vld [vmem:[#allocation7 + $0x7] ss:$0 sm:$0xff] }
 0x658   :  { %v469_v41 = vadd.f32 %v468_v39, %v467_v40 }
 0x65a   :  { %725 = vtanh.f32 %v469_v41 }
 0x660   :  { %v726_v42 = vpop.eup %725 }
 0x661   :  { %v471_v43 = vsub.f32 %v417_v19, %v726_v42 }
 0x671   :  { %v463_v44 = vpop.permute.xlu1 %462 }
 0x672   :  { %v472_v45 = vmul.f32 %v471_v43, %v463_v44 }
 0x674   :  { %v473_v46 = vadd.f32 %v726_v42, %v472_v45 }
 0x676   :  { %672 = vmatmul.msk.f32.vlgmr.msrb.gmra.mxu0 %vm133_vm3, %v473_v46 }
 0x6f3   :  { %v494_v47 = vpop.f32.mrf.mxu0 }
 0x6f4   :  { %v498_v49 = vadd.f32 %v497_v48, %v494_v47  ;;  %520 = vrot.lane.b32.xlu2 %v494_v47, %s847_s2 }
 0x6f6   :  { %v673_v50 = vmul.f32 -1.442695, %v498_v49 }
 0x6f8   :  { %727 = vpow2.f32 %v673_v50 }
 0x6fe   :  { %v728_v51 = vpop.eup %727 }
 0x6ff   :  { %v502_v52 = vadd.f32 1.0, %v728_v51 }
 0x701   :  { %729 = vrcp.f32 %v502_v52  ;;  %v514_v56 = vand.u32 2147483648, %v502_v52  ;;  %v512_v58 = vand.u32 2147483647, %v502_v52  ;;  %vm508_vm5 = vweird.f32 %v502_v52 }
 0x703   :  { %v515_v60 = vor.u32 1.1754944e-38, %v514_v56  ;;  %vm513_vm7 = vcmp.eq.f32.partialorder %v512_v58, 8.507059e+37 }
 0x707   :  { %v730_v53 = vpop.eup %729 }
 0x708   :  { %v504_v54 = vmul.f32 %v730_v53, %v502_v52  ;;  %vm509_vm4 = vweird.f32 %v730_v53 }
 0x709   :  { %vm510_vm6 = vmor %vm508_vm5, %vm509_vm4 }
 0x70a   :  { %v505_v55 = vsub.f32 1.0, %v504_v54 }
 0x70c   :  { %v506_v57 = vmul.f32 %v730_v53, %v505_v55 }
 0x70e   :  { %v507_v59 = vadd.f32 %v730_v53, %v506_v57 }
 0x710   :  { %v511_v61 = vsel %vm510_vm6, %v730_v53, %v507_v59 }
 0x711   :  { %v516_v62 = vsel %vm513_vm7, %v515_v60, %v511_v61 }
 0x712   :  { %518 = vrot.lane.b32.xlu0 %v516_v62, %s848_s28 }
 0x74e   :  { %v521_v63 = vpop.permute.xlu2 %520 }
 0x74f   :  { %v522_v0 = vadd.f32 %v949_v27, %v521_v63 }
 0x751   :  { %v524_v1 = vmul.f32 %v522_v0, %v516_v62 }
 0x753   :  { %v525_v3 = vadd.f32 %v524_v1, %v523_v2 }
 0x755   :  { %731 = vtanh.f32 %v525_v3 }
 0x75b   :  { %v732_v7 = vpop.eup %731 }
 0x75c   :  { %v527_v4 = vsub.f32 %v473_v46, %v732_v7 }
 0x784   :  { %v519_v5 = vpop.permute.xlu0 %518 }
 0x785   :  { %v528_v6 = vmul.f32 %v527_v4, %v519_v5 }
 0x787   :  { %v529_v8 = vadd.f32 %v732_v7, %v528_v6 }
 0x789   :  { %675 = vmatmul.msk.f32.vlgmr.msra.gmra.mxu1 %vm133_vm3, %v529_v8 }
 0x806   :  { %v550_v9 = vpop.f32.mrf.mxu1 }
 0x807   :  { %v554_v11 = vadd.f32 %v553_v10, %v550_v9  ;;  %576 = vrot.lane.b32.xlu1 %v550_v9, %s847_s2 }
 0x809   :  { %v676_v12 = vmul.f32 -1.442695, %v554_v11 }
 0x80b   :  { %733 = vpow2.f32 %v676_v12 }
 0x811   :  { %v734_v13 = vpop.eup %733 }
 0x812   :  { %v558_v14 = vadd.f32 1.0, %v734_v13 }
 0x814   :  { %735 = vrcp.f32 %v558_v14  ;;  %v570_v18 = vand.u32 2147483648, %v558_v14  ;;  %v568_v20 = vand.u32 2147483647, %v558_v14  ;;  %vm564_vm13 = vweird.f32 %v558_v14 }
 0x816   :  { %v571_v22 = vor.u32 1.1754944e-38, %v570_v18  ;;  %vm569_vm14 = vcmp.eq.f32.partialorder %v568_v20, 8.507059e+37 }
 0x81a   :  { %v736_v15 = vpop.eup %735 }
 0x81b   :  { %v560_v16 = vmul.f32 %v736_v15, %v558_v14  ;;  %vm565_vm12 = vweird.f32 %v736_v15 }
 0x81c   :  { %vm566_vm2 = vmor %vm564_vm13, %vm565_vm12 }
 0x81d   :  { %v561_v17 = vsub.f32 1.0, %v560_v16 }
 0x81f   :  { %v562_v19 = vmul.f32 %v736_v15, %v561_v17 }
 0x821   :  { %v563_v21 = vadd.f32 %v736_v15, %v562_v19 }
 0x823   :  { %v567_v23 = vsel %vm566_vm2, %v736_v15, %v563_v21 }
 0x824   :  { %v572_v24 = vsel %vm569_vm14, %v571_v22, %v567_v23 }
 0x825   :  { %574 = vrot.lane.b32.xlu2 %v572_v24, %s848_s28 }
 0x879   :  { %v577_v25 = vpop.permute.xlu1 %576 }
 0x87a   :  { %v578_v26 = vadd.f32 %v949_v27, %v577_v25 }
 0x87c   :  { %v580_v28 = vmul.f32 %v578_v26, %v572_v24 }
 0x87e   :  { %v581_v30 = vadd.f32 %v580_v28, %v579_v29 }
 0x87f   :  { %v575_v33 = vpop.permute.xlu2 %574 }
 0x880   :  { %737 = vtanh.f32 %v581_v30 }
 0x886   :  { %v738_v31 = vpop.eup %737 }
 0x887   :  { %v583_v32 = vsub.f32 %v529_v8, %v738_v31 }
 0x889   :  { %v584_v34 = vmul.f32 %v583_v32, %v575_v33 }
 0x88b   :  { %v585_v35 = vadd.f32 %v738_v31, %v584_v34 }
 0x88d   :  { %586 = vst.msk [vmem:[#allocation10] sm:$0x3] %vm98_vm8, %v585_v35  ;;  %678 = vmatmul.msk.f32.vlgmr.msra.gmra.mxu2 %vm133_vm3, %v585_v35  ;;  %vm614_vm3 = vcmask 25600  }
 0x88e   :  { %637 = dma.vmem_to_hbm [thread:$0]  %s633_s5, 32, %s635_s8, [#allocation11]  }
 0x910   :  { %v607_v27 = vpop.f32.mrf.mxu2 }
 0x911   :  { %610 = vrot.lane.b32.xlu0 %v607_v27, %s850_s9 }
 0x983   :  { %v611_v37 = vpop.permute.xlu0 %610 }
 0x984   :  { %v613_v38 = vadd.f32 %v690_v36, %v611_v37 }
 0x986   :  { %615 = vst.msk [vmem:[#allocation9] sm:$0x3] %vm614_vm3, %v613_v38 }
 0x987   :  { %626 = dma.vmem_to_hbm [thread:$0]  %s622_s11, 32, %s624_s14, [#allocation6]  }
 0x988   :  { %839 = dma.done.wait [#allocation6], 32  }
 0x989   :  { %840 = vsyncadd [#allocation6], 4294967264 }
 0x98a   :  { %841 = dma.done.wait [#allocation11], 32  }
 0x98b   :  { %842 = vsyncadd [#allocation11], 4294967264 }
 0x98c   :  { %646 = vsyncpa [#allocation5], 1 }
 0x98d   :  { %647 = vsyncpa [#allocation8], 1 }
 0x98e   :  { %648 = vsyncpa [#allocation6], 1 }
 0x98f   :  { %649 = vsyncpa [#allocation11], 1 }

</bundles_post_ra>
